<compile_context>
chip_gen: v6e
topology: v6e:2x2x1
jax: 0.10.0
libtpu: 0.0.40
codegen_flags: <defaults>
</compile_context>

<pallas_src>
import functools
import math

import jax
import jax.numpy as jnp
from jax import lax
from jax.experimental import pallas as pl
from jax.experimental.pallas import tpu as pltpu


_LANE = 128
_SUBLANE = 8
_BLOCK_BYTES_TARGET = 2 * 1024 * 1024    # per-block bytes target (f32 compute)
_MAX_SAMPLES_PER_BLOCK = 32              # bounds trace-time unrolling
_VMEM_LIMIT = 32 * 1024 * 1024           # <= v7x scoped VMEM


def _round_up(x, m):
    return (x + m - 1) // m * m


def _largest_aligned_divisor(total, align, cap):
    """Largest multiple of `align` that divides `total` and is <= cap (>= align)."""
    assert total % align == 0
    k = total // align
    best = align
    d = 1
    while align * d <= cap and d <= k:
        if k % d == 0:
            best = align * d
        d += 1
    return best


def _lfcc_stats_kernel(y_ref, wcol_ref, stat_ref, acc_ref, *, samples, chans, group):
    """Pass 1: per-row-block sum / sum-of-squares of the 1x1-conv response.

    Accumulates lane-wide into a (2G, TN) VMEM scratch; the single cross-lane
    reduce happens only at the last HW tile of each row block.
    """
    t = pl.program_id(1)

    @pl.when(t == 0)
    def _init():
        acc_ref[...] = jnp.zeros_like(acc_ref)

    yf = y_ref[...].astype(jnp.float32)                      # (R, TN) dense block
    sums, sqs = [], []
    for g in range(group):
        wcol = wcol_ref[g]                                   # (C, 1) lane-broadcast
        tot = None
        totsq = None
        for s in range(samples):
            ys = yf[s * chans:(s + 1) * chans, :]            # (C, TN) contiguous slab
            sig = jnp.sum(ys * wcol, axis=0, keepdims=True)  # VPU mult + sublane reduce
            sq = sig * sig
            tot = sig if tot is None else tot + sig
            totsq = sq if totsq is None else totsq + sq
        sums.append(tot)
        sqs.append(totsq)
    acc_ref[...] = acc_ref[...] + jnp.concatenate(sums + sqs, axis=0)   # (2G, TN)

    @pl.when(t == pl.num_programs(1) - 1)
    def _flush():
        stat_ref[0] = jnp.sum(acc_ref[...], axis=1, keepdims=True)      # (2G, 1)


def _lfcc_apply_kernel(y_ref, wcol_ref, shift_ref, out_ref, *, samples, chans, group):
    """Pass 2: fused (1x1 conv + folded BN) -> softmax over groups -> gating.

    One dense (R, TN) store per grid step.
    """
    cpg = chans // group
    yf = y_ref[...].astype(jnp.float32)                      # (R, TN) dense block
    tn = yf.shape[-1]

    out_slabs = []
    for s in range(samples):
        ys = yf[s * chans:(s + 1) * chans, :]                # (C, TN)
        # BN pre-folded: wcol = gamma*rsqrt(var+eps)*w, shift = beta - mu*scale.
        sig = [shift_ref[g] + jnp.sum(ys * wcol_ref[g], axis=0, keepdims=True)
               for g in range(group)]                        # G x (1, TN)

        m = sig[0]
        for g in range(1, group):
            m = jnp.maximum(m, sig[g])
        exps = [jnp.exp(x - m) for x in sig]
        den = exps[0]
        for g in range(1, group):
            den = den + exps[g]
        inv = pl.reciprocal(den, approx=True)                # EUP slot
        inv = inv * (2.0 - den * inv)                        # one Newton step

        gate = jnp.concatenate(
            [jnp.broadcast_to(exps[g] * inv, (cpg, tn)) for g in range(group)],
            axis=0)                                          # (C, TN)
        out_slabs.append(ys * gate)

    out = jnp.concatenate(out_slabs, axis=0)                 # (R, TN)
    out_ref[...] = out.astype(out_ref.dtype)


def lfcc_forward(y, conv_w, bn_gamma, bn_beta, *, kernel_size=1, group=2, eps=1e-5):
    """Pallas implementation of LFCC.forward.  y is NCHW."""
    N, C, H, W = y.shape
    if kernel_size != 1:
        # TODO(synk): for kernel_size > 1 the reference PyTorch forward itself
        # fails (unfold yields (h-k+1)*(w-k+1) columns reshaped to h*w), so
        # only the kernel_size == 1 path is implemented.
        raise NotImplementedError("LFCC forward only type-checks for kernel_size=1")
    assert C % group == 0

    G = group * kernel_size * kernel_size
    HW = H * W
    HWp = _round_up(HW, _LANE)
    n_unit = _SUBLANE // math.gcd(_SUBLANE, C)    # samples so that rows are 8-aligned
    Np = _round_up(N, n_unit)
    NC = Np * C

    # Free reshapes; pad (copy) only when alignment requires it.  Zero padding
    # contributes 0 to the BN sums and is sliced off at the end.
    y3 = y.reshape(N, C, HW)
    if (Np, HWp) != (N, HW):
        y3 = jnp.pad(y3, ((0, Np - N), (0, 0), (0, HWp - HW)))
    y2 = y3.reshape(NC, HWp)                      # native dtype on the wire

    # Block sizing from a VMEM byte budget (f32 compute inside the kernels).
    itemsize = max(jnp.dtype(y.dtype).itemsize, 4)
    base_r = C * n_unit                           # multiple of 8, whole samples
    tn_cap = max(_LANE, _BLOCK_BYTES_TARGET // (base_r * itemsize))
    TN = _largest_aligned_divisor(HWp, _LANE, tn_cap)
    r_cap = max(base_r, min(_MAX_SAMPLES_PER_BLOCK * C,
                            _BLOCK_BYTES_TARGET // (TN * itemsize)))
    R = _largest_aligned_divisor(NC, base_r, r_cap)
    S = R // C
    RB = NC // R
    NT = HWp // TN

    w2 = conv_w.reshape(G, C).astype(jnp.float32)
    wcol = w2[:, :, None]                         # (G, C, 1)

    y_spec = pl.BlockSpec((R, TN), lambda rb, t: (rb, t))
    wcol_spec = pl.BlockSpec((G, C, 1), lambda rb, t: (0, 0, 0))

    # ---- pass 1: per-row-block sum / sum-of-squares of the conv response ----
    stats = pl.pallas_call(
        functools.partial(_lfcc_stats_kernel, samples=S, chans=C, group=G),
        out_shape=jax.ShapeDtypeStruct((RB, 2 * G, 1), jnp.float32),
        grid=(RB, NT),
        in_specs=[y_spec, wcol_spec],
        out_specs=pl.BlockSpec((1, 2 * G, 1), lambda rb, t: (rb, 0, 0)),
        scratch_shapes=[pltpu.VMEM((2 * G, TN), jnp.float32)],
        compiler_params=pltpu.CompilerParams(
            dimension_semantics=("parallel", "arbitrary"),
            vmem_limit_bytes=_VMEM_LIMIT),
        cost_estimate=pl.CostEstimate(
            flops=2 * (C + 2) * G * Np * HWp,
            transcendentals=0,
            bytes_accessed=y2.size * y2.dtype.itemsize),
    )(y2, wcol)

    # ---- tiny scalar math: fold BN (training-mode batch stats) into the conv.
    tot = jnp.sum(stats, axis=0)                  # (2G, 1)
    cnt = jnp.float32(N * HW)                     # true (unpadded) count
    mu = tot[:G, 0] / cnt
    var = jnp.maximum(tot[G:, 0] / cnt - mu * mu, 0.0)   # biased variance (BN default)
    # TODO(synk): one-pass E[x^2]-E[x]^2 can cancel for responses whose mean >>
    # std; switch to a centered second pass if that regime matters.
    scale = bn_gamma.reshape(G).astype(jnp.float32) * lax.rsqrt(var + eps)
    shift = bn_beta.reshape(G).astype(jnp.float32) - mu * scale
    wcol_s = (w2 * scale[:, None])[:, :, None]    # (G, C, 1) BN-folded weights

    # ---- pass 2: fused conv+BN, softmax over groups, gating (fully parallel) -
    out2 = pl.pallas_call(
        functools.partial(_lfcc_apply_kernel, samples=S, chans=C, group=G),
        out_shape=jax.ShapeDtypeStruct((NC, HWp), y.dtype),
        grid=(RB, NT),
        in_specs=[y_spec, wcol_spec,
                  pl.BlockSpec(memory_space=pltpu.MemorySpace.SMEM)],
        out_specs=y_spec,
        compiler_params=pltpu.CompilerParams(
            dimension_semantics=("parallel", "parallel"),
            vmem_limit_bytes=_VMEM_LIMIT),
        cost_estimate=pl.CostEstimate(
            flops=2 * (G * (C + 4) + C) * Np * HWp,
            transcendentals=(G + 1) * Np * HWp,
            bytes_accessed=2 * y2.size * y2.dtype.itemsize),
    )(y2, wcol_s, shift)
    # TODO(synk): for very large C, route the 1x1 conv through the MXU
    # (jnp.dot) instead of the trace-time-unrolled VPU path.

    return out2.reshape(Np, C, HWp)[:N, :, :HW].reshape(N, C, H, W)


def _lfcc_reference(y, conv_w, bn_gamma, bn_beta, *, group, eps=1e-5):
    """Pure-JAX reference following the PyTorch op sequence (kernel_size=1)."""
    N, C, H, W = y.shape
    G = conv_w.shape[0]
    w = conv_w.reshape(G, C)
    sigma = jnp.einsum('oc,nchw->nohw', w, y)                     # 1x1 conv
    mu = sigma.mean(axis=(0, 2, 3), keepdims=True)
    var = ((sigma - mu) ** 2).mean(axis=(0, 2, 3), keepdims=True)
    sigma = (sigma - mu) / jnp.sqrt(var + eps)
    sigma = sigma * bn_gamma.reshape(1, -1, 1, 1) + bn_beta.reshape(1, -1, 1, 1)
    sigma = jax.nn.softmax(sigma, axis=1)                         # (N, G, H, W)
    gate = jnp.repeat(sigma, C // group, axis=1)                  # (N, C, H, W)
    return y * gate


if __name__ == "__main__":
    key = jax.random.PRNGKey(0)
    k_y, k_w = jax.random.split(key)

    N, C, H, W = 2, 4, 16, 16
    kernel_size, group = 1, 2
    out_ch = group * kernel_size * kernel_size

    y = jax.random.normal(k_y, (N, C, H, W), dtype=jnp.float32)

    # Conv weight: kaiming_normal_(mode='fan_out', nonlinearity='relu')
    fan_out = out_ch * kernel_size * kernel_size
    std = math.sqrt(2.0 / fan_out)
    conv_w = jax.random.normal(
        k_w, (out_ch, C, kernel_size, kernel_size), dtype=jnp.float32) * std

    # BatchNorm2d default parameter init.
    bn_gamma = jnp.ones((out_ch,), jnp.float32)
    bn_beta = jnp.zeros((out_ch,), jnp.float32)

    fwd = jax.jit(functools.partial(lfcc_forward,
                                    kernel_size=kernel_size, group=group))
    out = fwd(y, conv_w, bn_gamma, bn_beta)
    jax.block_until_ready(out)

    ref = _lfcc_reference(y, conv_w, bn_gamma, bn_beta, group=group)
    assert out.shape == (N, C, H, W)
    # approx-reciprocal (+ Newton step) and one-pass BN stats stay well inside
    # 1e-4 for these magnitudes.
    assert jnp.allclose(out, ref, rtol=1e-4, atol=1e-4), "mismatch vs reference"

    print("KERNEL_OK")
</pallas_src>

<mosaic_0001>
module attributes {stable_mosaic.version = 11 : i64} {
  func.func @_lfcc_stats_kernel(%arg0: i32, %arg1: i32, %arg2: memref<8x256xf32, #tpu.memory_space<vmem>>, %arg3: memref<2x4x1xf32, #tpu.memory_space<vmem>>, %arg4: memref<1x4x1xf32, #tpu.memory_space<vmem>>, %arg5: memref<4x256xf32, #tpu.memory_space<vmem>>) attributes {dimension_semantics = [#tpu.dimension_semantics<parallel>, #tpu.dimension_semantics<arbitrary>], iteration_bounds = array<i64: 1, 1>, scalar_prefetch = 0 : i64, scratch_operands = 1 : i64, tpu.core_type = #tpu.core_type<tc>, window_params = [{transform_indices = @transform_0, window_bounds = array<i64: 8, 256>}, {pipeline_mode = #tpu.pipeline_mode<synchronous>, transform_indices = @transform_1, window_bounds = array<i64: 2, 4, 1>}, {transform_indices = @transform_2, window_bounds = array<i64: 1, 4, 1>}]} {
    %c0_i32 = arith.constant 0 : i32
    %0 = arith.cmpi eq, %arg1, %c0_i32 : i32
    %1 = arith.extui %0 : i1 to i32
    %c0_i32_0 = arith.constant 0 : i32
    %2 = arith.cmpi ne, %1, %c0_i32_0 : i32
    scf.if %2 {
      %cst_16 = arith.constant 0.000000e+00 : f32
      %43 = vector.broadcast %cst_16 : f32 to vector<4x256xf32>
      %c0_17 = arith.constant 0 : index
      %c0_18 = arith.constant 0 : index
      %44 = vector.load %arg5[%c0_17, %c0_18] : memref<4x256xf32, #tpu.memory_space<vmem>>, vector<4x256xf32>
      tpu.vector_store %arg5[%c0_17, %c0_18], %43 {strides = array<i32>} : memref<4x256xf32, #tpu.memory_space<vmem>>, vector<4x256xf32>,
    } else {
    }
    %c0 = arith.constant 0 : index
    %c0_1 = arith.constant 0 : index
    %3 = vector.load %arg2[%c0, %c0_1] : memref<8x256xf32, #tpu.memory_space<vmem>>, vector<8x256xf32>
    %c0_2 = arith.constant 0 : index
    %c0_3 = arith.constant 0 : index
    %c0_4 = arith.constant 0 : index
    %4 = vector.load %arg3[%c0_2, %c0_3, %c0_4] : memref<2x4x1xf32, #tpu.memory_space<vmem>>, vector<1x4x1xf32>
    %5 = vector.shape_cast %4 : vector<1x4x1xf32> to vector<4x1xf32>
    %6 = vector.extract_strided_slice %3 {offsets = [0, 0], sizes = [4, 256], strides = [1, 1]} : vector<8x256xf32> to vector<4x256xf32>
    %7 = vector.broadcast %5 : vector<4x1xf32> to vector<4x256xf32>
    %8 = arith.mulf %6, %7 : vector<4x256xf32>
    %cst = arith.constant dense<0.000000e+00> : vector<256xf32>
    %9 = vector.multi_reduction <add>, %8, %cst [0] : vector<4x256xf32> to vector<256xf32>
    %10 = vector.shape_cast %9 : vector<256xf32> to vector<1x256xf32>
    %11 = arith.mulf %10, %10 : vector<1x256xf32>
    %12 = vector.extract_strided_slice %3 {offsets = [4, 0], sizes = [4, 256], strides = [1, 1]} : vector<8x256xf32> to vector<4x256xf32>
    %13 = vector.broadcast %5 : vector<4x1xf32> to vector<4x256xf32>
    %14 = arith.mulf %12, %13 : vector<4x256xf32>
    %cst_5 = arith.constant dense<0.000000e+00> : vector<256xf32>
    %15 = vector.multi_reduction <add>, %14, %cst_5 [0] : vector<4x256xf32> to vector<256xf32>
    %16 = vector.shape_cast %15 : vector<256xf32> to vector<1x256xf32>
    %17 = arith.mulf %16, %16 : vector<1x256xf32>
    %18 = arith.addf %10, %16 : vector<1x256xf32>
    %19 = arith.addf %11, %17 : vector<1x256xf32>
    %c1 = arith.constant 1 : index
    %c0_6 = arith.constant 0 : index
    %c0_7 = arith.constant 0 : index
    %20 = vector.load %arg3[%c1, %c0_6, %c0_7] : memref<2x4x1xf32, #tpu.memory_space<vmem>>, vector<1x4x1xf32>
    %21 = vector.shape_cast %20 : vector<1x4x1xf32> to vector<4x1xf32>
    %22 = vector.extract_strided_slice %3 {offsets = [0, 0], sizes = [4, 256], strides = [1, 1]} : vector<8x256xf32> to vector<4x256xf32>
    %23 = vector.broadcast %21 : vector<4x1xf32> to vector<4x256xf32>
    %24 = arith.mulf %22, %23 : vector<4x256xf32>
    %cst_8 = arith.constant dense<0.000000e+00> : vector<256xf32>
    %25 = vector.multi_reduction <add>, %24, %cst_8 [0] : vector<4x256xf32> to vector<256xf32>
    %26 = vector.shape_cast %25 : vector<256xf32> to vector<1x256xf32>
    %27 = arith.mulf %26, %26 : vector<1x256xf32>
    %28 = vector.extract_strided_slice %3 {offsets = [4, 0], sizes = [4, 256], strides = [1, 1]} : vector<8x256xf32> to vector<4x256xf32>
    %29 = vector.broadcast %21 : vector<4x1xf32> to vector<4x256xf32>
    %30 = arith.mulf %28, %29 : vector<4x256xf32>
    %cst_9 = arith.constant dense<0.000000e+00> : vector<256xf32>
    %31 = vector.multi_reduction <add>, %30, %cst_9 [0] : vector<4x256xf32> to vector<256xf32>
    %32 = vector.shape_cast %31 : vector<256xf32> to vector<1x256xf32>
    %33 = arith.mulf %32, %32 : vector<1x256xf32>
    %34 = arith.addf %26, %32 : vector<1x256xf32>
    %35 = arith.addf %27, %33 : vector<1x256xf32>
    %c0_10 = arith.constant 0 : index
    %c0_11 = arith.constant 0 : index
    %36 = vector.load %arg5[%c0_10, %c0_11] : memref<4x256xf32, #tpu.memory_space<vmem>>, vector<4x256xf32>
    %37 = tpu.concatenate %18, %34, %19, %35 in 0 : vector<1x256xf32>, vector<1x256xf32>, vector<1x256xf32>, vector<1x256xf32> -> vector<4x256xf32>
    %38 = arith.addf %36, %37 : vector<4x256xf32>
    %c0_12 = arith.constant 0 : index
    %c0_13 = arith.constant 0 : index
    %39 = vector.load %arg5[%c0_12, %c0_13] : memref<4x256xf32, #tpu.memory_space<vmem>>, vector<4x256xf32>
    tpu.vector_store %arg5[%c0_12, %c0_13], %38 {strides = array<i32>} : memref<4x256xf32, #tpu.memory_space<vmem>>, vector<4x256xf32>,
    %c0_i32_14 = arith.constant 0 : i32
    %40 = arith.cmpi eq, %arg1, %c0_i32_14 : i32
    %41 = arith.extui %40 : i1 to i32
    %c0_i32_15 = arith.constant 0 : i32
    %42 = arith.cmpi ne, %41, %c0_i32_15 : i32
    scf.if %42 {
      %c0_16 = arith.constant 0 : index
      %c0_17 = arith.constant 0 : index
      %43 = vector.load %arg5[%c0_16, %c0_17] : memref<4x256xf32, #tpu.memory_space<vmem>>, vector<4x256xf32>
      %cst_18 = arith.constant dense<0.000000e+00> : vector<4xf32>
      %44 = vector.multi_reduction <add>, %43, %cst_18 [1] : vector<4x256xf32> to vector<4xf32>
      %45 = vector.shape_cast %44 : vector<4xf32> to vector<4x1xf32>
      %c0_19 = arith.constant 0 : index
      %c0_20 = arith.constant 0 : index
      %c0_21 = arith.constant 0 : index
      %46 = vector.load %arg4[%c0_19, %c0_20, %c0_21] : memref<1x4x1xf32, #tpu.memory_space<vmem>>, vector<1x4x1xf32>
      %47 = vector.shape_cast %46 : vector<1x4x1xf32> to vector<4x1xf32>
      %48 = vector.shape_cast %45 : vector<4x1xf32> to vector<1x4x1xf32>
      tpu.vector_store %arg4[%c0_19, %c0_20, %c0_21], %48 {strides = array<i32>} : memref<1x4x1xf32, #tpu.memory_space<vmem>>, vector<1x4x1xf32>,
    } else {
    }
    return
  }
  func.func @transform_0(%arg0: i32, %arg1: i32) -> (i32, i32) {
    %c0_i32 = arith.constant 0 : i32
    return %arg0, %arg1 : i32, i32
  }
  func.func @transform_1(%arg0: i32, %arg1: i32) -> (i32, i32, i32) {
    %c0_i32 = arith.constant 0 : i32
    %c0_i32_0 = arith.constant 0 : i32
    %c0_i32_1 = arith.constant 0 : i32
    %c0_i32_2 = arith.constant 0 : i32
    return %c0_i32, %c0_i32_0, %c0_i32_1 : i32, i32, i32
  }
  func.func @transform_2(%arg0: i32, %arg1: i32) -> (i32, i32, i32) {
    %c0_i32 = arith.constant 0 : i32
    %c0_i32_0 = arith.constant 0 : i32
    %c0_i32_1 = arith.constant 0 : i32
    return %arg0, %c0_i32, %c0_i32_0 : i32, i32, i32
  }
}

module attributes {stable_mosaic.version = 11 : i64} {
  func.func @_lfcc_apply_kernel(%arg0: i32, %arg1: i32, %arg2: memref<8x256xf32, #tpu.memory_space<vmem>>, %arg3: memref<2x4x1xf32, #tpu.memory_space<vmem>>, %arg4: memref<2xf32, #tpu.memory_space<smem>>, %arg5: memref<8x256xf32, #tpu.memory_space<vmem>>) attributes {dimension_semantics = [#tpu.dimension_semantics<parallel>, #tpu.dimension_semantics<parallel>], iteration_bounds = array<i64: 1, 1>, scalar_prefetch = 0 : i64, scratch_operands = 0 : i64, tpu.core_type = #tpu.core_type<tc>, window_params = [{transform_indices = @transform_0, window_bounds = array<i64: 8, 256>}, {pipeline_mode = #tpu.pipeline_mode<synchronous>, transform_indices = @transform_1, window_bounds = array<i64: 2, 4, 1>}, {transform_indices = @transform_2, window_bounds = array<i64: 2>}, {transform_indices = @transform_3, window_bounds = array<i64: 8, 256>}]} {
    %c0 = arith.constant 0 : index
    %c0_0 = arith.constant 0 : index
    %0 = vector.load %arg2[%c0, %c0_0] : memref<8x256xf32, #tpu.memory_space<vmem>>, vector<8x256xf32>
    %1 = vector.extract_strided_slice %0 {offsets = [0, 0], sizes = [4, 256], strides = [1, 1]} : vector<8x256xf32> to vector<4x256xf32>
    %c0_1 = arith.constant 0 : index
    %2 = memref.load %arg4[%c0_1] : memref<2xf32, #tpu.memory_space<smem>>
    %c0_2 = arith.constant 0 : index
    %c0_3 = arith.constant 0 : index
    %c0_4 = arith.constant 0 : index
    %3 = vector.load %arg3[%c0_2, %c0_3, %c0_4] : memref<2x4x1xf32, #tpu.memory_space<vmem>>, vector<1x4x1xf32>
    %4 = vector.shape_cast %3 : vector<1x4x1xf32> to vector<4x1xf32>
    %5 = vector.broadcast %4 : vector<4x1xf32> to vector<4x256xf32>
    %6 = arith.mulf %1, %5 : vector<4x256xf32>
    %cst = arith.constant dense<0.000000e+00> : vector<256xf32>
    %7 = vector.multi_reduction <add>, %6, %cst [0] : vector<4x256xf32> to vector<256xf32>
    %8 = vector.shape_cast %7 : vector<256xf32> to vector<1x256xf32>
    %9 = vector.broadcast %2 : f32 to vector<1x256xf32>
    %10 = arith.addf %9, %8 : vector<1x256xf32>
    %c1 = arith.constant 1 : index
    %11 = memref.load %arg4[%c1] : memref<2xf32, #tpu.memory_space<smem>>
    %c1_5 = arith.constant 1 : index
    %c0_6 = arith.constant 0 : index
    %c0_7 = arith.constant 0 : index
    %12 = vector.load %arg3[%c1_5, %c0_6, %c0_7] : memref<2x4x1xf32, #tpu.memory_space<vmem>>, vector<1x4x1xf32>
    %13 = vector.shape_cast %12 : vector<1x4x1xf32> to vector<4x1xf32>
    %14 = vector.broadcast %13 : vector<4x1xf32> to vector<4x256xf32>
    %15 = arith.mulf %1, %14 : vector<4x256xf32>
    %cst_8 = arith.constant dense<0.000000e+00> : vector<256xf32>
    %16 = vector.multi_reduction <add>, %15, %cst_8 [0] : vector<4x256xf32> to vector<256xf32>
    %17 = vector.shape_cast %16 : vector<256xf32> to vector<1x256xf32>
    %18 = vector.broadcast %11 : f32 to vector<1x256xf32>
    %19 = arith.addf %18, %17 : vector<1x256xf32>
    %20 = arith.maximumf %10, %19 : vector<1x256xf32>
    %21 = arith.subf %10, %20 : vector<1x256xf32>
    %22 = math.exp %21 : vector<1x256xf32>
    %23 = arith.subf %19, %20 : vector<1x256xf32>
    %24 = math.exp %23 : vector<1x256xf32>
    %25 = arith.addf %22, %24 : vector<1x256xf32>
    %26 = tpu.reciprocal %25 {approx = true} : vector<1x256xf32> -> vector<1x256xf32>
    %27 = arith.mulf %25, %26 : vector<1x256xf32>
    %cst_9 = arith.constant 2.000000e+00 : f32
    %28 = vector.broadcast %cst_9 : f32 to vector<1x256xf32>
    %29 = arith.subf %28, %27 : vector<1x256xf32>
    %30 = arith.mulf %26, %29 : vector<1x256xf32>
    %31 = arith.mulf %22, %30 : vector<1x256xf32>
    %32 = vector.shape_cast %31 : vector<1x256xf32> to vector<1x256xf32>
    %33 = vector.broadcast %32 : vector<1x256xf32> to vector<2x256xf32>
    %34 = arith.mulf %24, %30 : vector<1x256xf32>
    %35 = vector.shape_cast %34 : vector<1x256xf32> to vector<1x256xf32>
    %36 = vector.broadcast %35 : vector<1x256xf32> to vector<2x256xf32>
    %37 = tpu.concatenate %33, %36 in 0 : vector<2x256xf32>, vector<2x256xf32> -> vector<4x256xf32>
    %38 = arith.mulf %1, %37 : vector<4x256xf32>
    %39 = vector.extract_strided_slice %0 {offsets = [4, 0], sizes = [4, 256], strides = [1, 1]} : vector<8x256xf32> to vector<4x256xf32>
    %c0_10 = arith.constant 0 : index
    %40 = memref.load %arg4[%c0_10] : memref<2xf32, #tpu.memory_space<smem>>
    %c0_11 = arith.constant 0 : index
    %c0_12 = arith.constant 0 : index
    %c0_13 = arith.constant 0 : index
    %41 = vector.load %arg3[%c0_11, %c0_12, %c0_13] : memref<2x4x1xf32, #tpu.memory_space<vmem>>, vector<1x4x1xf32>
    %42 = vector.shape_cast %41 : vector<1x4x1xf32> to vector<4x1xf32>
    %43 = vector.broadcast %42 : vector<4x1xf32> to vector<4x256xf32>
    %44 = arith.mulf %39, %43 : vector<4x256xf32>
    %cst_14 = arith.constant dense<0.000000e+00> : vector<256xf32>
    %45 = vector.multi_reduction <add>, %44, %cst_14 [0] : vector<4x256xf32> to vector<256xf32>
    %46 = vector.shape_cast %45 : vector<256xf32> to vector<1x256xf32>
    %47 = vector.broadcast %40 : f32 to vector<1x256xf32>
    %48 = arith.addf %47, %46 : vector<1x256xf32>
    %c1_15 = arith.constant 1 : index
    %49 = memref.load %arg4[%c1_15] : memref<2xf32, #tpu.memory_space<smem>>
    %c1_16 = arith.constant 1 : index
    %c0_17 = arith.constant 0 : index
    %c0_18 = arith.constant 0 : index
    %50 = vector.load %arg3[%c1_16, %c0_17, %c0_18] : memref<2x4x1xf32, #tpu.memory_space<vmem>>, vector<1x4x1xf32>
    %51 = vector.shape_cast %50 : vector<1x4x1xf32> to vector<4x1xf32>
    %52 = vector.broadcast %51 : vector<4x1xf32> to vector<4x256xf32>
    %53 = arith.mulf %39, %52 : vector<4x256xf32>
    %cst_19 = arith.constant dense<0.000000e+00> : vector<256xf32>
    %54 = vector.multi_reduction <add>, %53, %cst_19 [0] : vector<4x256xf32> to vector<256xf32>
    %55 = vector.shape_cast %54 : vector<256xf32> to vector<1x256xf32>
    %56 = vector.broadcast %49 : f32 to vector<1x256xf32>
    %57 = arith.addf %56, %55 : vector<1x256xf32>
    %58 = arith.maximumf %48, %57 : vector<1x256xf32>
    %59 = arith.subf %48, %58 : vector<1x256xf32>
    %60 = math.exp %59 : vector<1x256xf32>
    %61 = arith.subf %57, %58 : vector<1x256xf32>
    %62 = math.exp %61 : vector<1x256xf32>
    %63 = arith.addf %60, %62 : vector<1x256xf32>
    %64 = tpu.reciprocal %63 {approx = true} : vector<1x256xf32> -> vector<1x256xf32>
    %65 = arith.mulf %63, %64 : vector<1x256xf32>
    %cst_20 = arith.constant 2.000000e+00 : f32
    %66 = vector.broadcast %cst_20 : f32 to vector<1x256xf32>
    %67 = arith.subf %66, %65 : vector<1x256xf32>
    %68 = arith.mulf %64, %67 : vector<1x256xf32>
    %69 = arith.mulf %60, %68 : vector<1x256xf32>
    %70 = vector.shape_cast %69 : vector<1x256xf32> to vector<1x256xf32>
    %71 = vector.broadcast %70 : vector<1x256xf32> to vector<2x256xf32>
    %72 = arith.mulf %62, %68 : vector<1x256xf32>
    %73 = vector.shape_cast %72 : vector<1x256xf32> to vector<1x256xf32>
    %74 = vector.broadcast %73 : vector<1x256xf32> to vector<2x256xf32>
    %75 = tpu.concatenate %71, %74 in 0 : vector<2x256xf32>, vector<2x256xf32> -> vector<4x256xf32>
    %76 = arith.mulf %39, %75 : vector<4x256xf32>
    %77 = tpu.concatenate %38, %76 in 0 : vector<4x256xf32>, vector<4x256xf32> -> vector<8x256xf32>
    %c0_21 = arith.constant 0 : index
    %c0_22 = arith.constant 0 : index
    %78 = vector.load %arg5[%c0_21, %c0_22] : memref<8x256xf32, #tpu.memory_space<vmem>>, vector<8x256xf32>
    tpu.vector_store %arg5[%c0_21, %c0_22], %77 {strides = array<i32>} : memref<8x256xf32, #tpu.memory_space<vmem>>, vector<8x256xf32>,
    return
  }
  func.func @transform_0(%arg0: i32, %arg1: i32) -> (i32, i32) {
    %c0_i32 = arith.constant 0 : i32
    return %arg0, %arg1 : i32, i32
  }
  func.func @transform_1(%arg0: i32, %arg1: i32) -> (i32, i32, i32) {
    %c0_i32 = arith.constant 0 : i32
    %c0_i32_0 = arith.constant 0 : i32
    %c0_i32_1 = arith.constant 0 : i32
    %c0_i32_2 = arith.constant 0 : i32
    return %c0_i32, %c0_i32_0, %c0_i32_1 : i32, i32, i32
  }
  func.func @transform_2(%arg0: i32, %arg1: i32) -> i32 {
    %c0_i32 = arith.constant 0 : i32
    %c0_i32_0 = arith.constant 0 : i32
    return %c0_i32 : i32
  }
  func.func @transform_3(%arg0: i32, %arg1: i32) -> (i32, i32) {
    %c0_i32 = arith.constant 0 : i32
    return %arg0, %arg1 : i32, i32
  }
}

</mosaic_0001>

<bundles_post_ra>
// kernel: lfcc_forward.3
= control target key start
LH: loop header
LB: loop body
LE: loop exit
PB: predicated region body
PF: predicated region fallthrough
CT: control target
= control target key end

     0   :  { %8 = vsyncpa [#allocation3], 0  ;;  %s330_s0 = inlined_call_operand.vmem [shape: f32[8,256], index: 0, kind: input, shape index: {}]   ;;  %s331_s1 = inlined_call_operand.vmem [shape: f32[2,4,1], index: 1, kind: input, shape index: {}]   ;;  %s332_s2 = inlined_call_operand.vmem [shape: f32[2], index: 2, kind: input, shape index: {}]   ;;  %s333_s3 = inlined_call_operand.vmem [shape: f32[8,256], index: 3, kind: output, shape index: {}]  }
   0x1   :  { %s19_s14 = sshll.u32 %s332_s2, 4  ;;  %s20_s14 = int_to_ptr.vmem [resolvable:$true] %s19_s14 }
   0x2   :  { %s244_s15 = scalar_lea.vmem %s20_s14, 16  ;;  %p249_p1 = scmp.lt.s32.totalorder %s20_s14, %s20_s14 }
   0x3   :  { %p245_p0 = scmp.ne.s32.totalorder %s20_s14, %s244_s15  ;;  %p250_p2 = scmp.lt.s32.totalorder %s244_s15, %s244_s15 }
   0x5   :  { %p251_p3 = por %p250_p2, %p249_p1 }
   0x7   :  { %p252_p4 = pnand %p251_p3, %p245_p0 }
   0x9   :  { %255 = shalt.err (!%p252_p4)
}
   0xa   :  { %s258_s16 = smov [#allocation2]  }
   0xb   :  { %22 = dma.vmem_to_smem %s20_s14, 16, %s258_s16, [#allocation3]  }
   0xc   :  { %256 = dma.done.wait [#allocation3], 16  }
   0xd   :  { %257 = vsyncadd [#allocation3], 4294967280 }
   0xe   :  { %26 = sfence }
   0xf   :  { %v30_v0 = vld [vmem:[%s331_s1] sm:$0xf]  ;;  %v259_v1 = vmov 0   ;;  %v216_v2 = vld [vmem:[%s331_s1 + $0x4] sm:$0xf]  ;;  %v297_v4 = vld [vmem:[%s330_s0 + $0x8] sm:$0xff] }
  0x10   :  { %219 = vset.pattern.permute.xlu0 %v259_v1  ;;  %v292_v3 = vld [vmem:[%s330_s0] sm:$0xff]  ;;  %vm38_vm0 = vcmask 1043456   ;;  %s311_s0 = sld [smem:[#allocation2]]  ;;  %vm111_vm1 = vcmask 1041408  }
  0x11   :  { %33 = vperm.xlu0 %219, %v30_v0   ;;  %s215_s1 = sld [smem:[#allocation2 + $0x1]] }
  0x15   :  { %61 = vperm.xlu0 %219, %v216_v2  }
  0x16   :  { %v53_v58 = vstv %s311_s0 }
  0x17   :  { %v80_v1 = vstv %s215_s1 }
  0x8c   :  { %v34_v5 = vpop.permute.xlu0 %33 }
  0x8d   :  { %v36_v6 = vmul.f32 %v34_v5, %v292_v3  ;;  %v37_v7 = vmul.f32 %v34_v5, %v297_v4  ;;  %v116_v8 = vrot.slane %v34_v5, 4 }
  0x8f   :  { %v39_v9 = vsel %vm38_vm0, %v36_v6, 0.0  ;;  %v46_v10 = vsel %vm38_vm0, %v37_v7, 0.0  ;;  %v118_v11 = vmul.f32 %v116_v8, %v292_v3  ;;  %v119_v12 = vmul.f32 %v116_v8, %v297_v4 }
  0x90   :  { %v40_v13 = vrot.slane %v39_v9, 4  ;;  %v47_v14 = vrot.slane %v46_v10, 4  ;;  %v62_v15 = vpop.permute.xlu0 %61 }
  0x91   :  { %v122_v16 = vrot.slane %v118_v11, 4  ;;  %v123_v17 = vrot.slane %v119_v12, 4  ;;  %v64_v18 = vmul.f32 %v62_v15, %v292_v3  ;;  %v65_v19 = vmul.f32 %v62_v15, %v297_v4 }
  0x92   :  { %v41_v20 = vadd.f32 %v40_v13, %v39_v9  ;;  %v48_v21 = vadd.f32 %v47_v14, %v46_v10  ;;  %v142_v22 = vrot.slane %v62_v15, 4 }
  0x93   :  { %v126_v23 = vsel %vm38_vm0, %v122_v16, 0.0  ;;  %v133_v24 = vsel %vm38_vm0, %v123_v17, 0.0  ;;  %v66_v25 = vsel %vm38_vm0, %v64_v18, 0.0  ;;  %v73_v26 = vsel %vm38_vm0, %v65_v19, 0.0 }
  0x94   :  { %v42_v27 = vrot.slane %v41_v20, 2  ;;  %v49_v28 = vrot.slane %v48_v21, 2  ;;  %v127_v29 = vrot.slane %v126_v23, 4  ;;  %v134_v30 = vrot.slane %v133_v24, 4 }
  0x95   :  { %v67_v31 = vrot.slane %v66_v25, 4  ;;  %v74_v32 = vrot.slane %v73_v26, 4  ;;  %v144_v33 = vmul.f32 %v142_v22, %v292_v3  ;;  %v145_v34 = vmul.f32 %v142_v22, %v297_v4 }
  0x96   :  { %v43_v35 = vadd.f32 %v42_v27, %v41_v20  ;;  %v50_v36 = vadd.f32 %v49_v28, %v48_v21  ;;  %v128_v37 = vadd.f32 %v127_v29, %v126_v23  ;;  %v135_v38 = vadd.f32 %v134_v30, %v133_v24 }
  0x97   :  { %v68_v39 = vadd.f32 %v67_v31, %v66_v25  ;;  %v75_v40 = vadd.f32 %v74_v32, %v73_v26  ;;  %v148_v41 = vrot.slane %v144_v33, 4  ;;  %v149_v42 = vrot.slane %v145_v34, 4 }
  0x98   :  { %v44_v43 = vrot.slane %v43_v35, 1  ;;  %v51_v44 = vrot.slane %v50_v36, 1  ;;  %v129_v45 = vrot.slane %v128_v37, 2  ;;  %v136_v46 = vrot.slane %v135_v38, 2 }
  0x99   :  { %v69_v47 = vrot.slane %v68_v39, 2  ;;  %v76_v48 = vrot.slane %v75_v40, 2  ;;  %v152_v49 = vsel %vm38_vm0, %v148_v41, 0.0  ;;  %v159_v50 = vsel %vm38_vm0, %v149_v42, 0.0 }
  0x9a   :  { %v130_v51 = vadd.f32 %v129_v45, %v128_v37  ;;  %v153_v54 = vrot.slane %v152_v49, 4  ;;  %v160_v55 = vrot.slane %v159_v50, 4  ;;  %v45_v56 = vadd.f32 %v44_v43, %v43_v35 }
  0x9b   :  { %v70_v52 = vadd.f32 %v69_v47, %v68_v39  ;;  %v77_v53 = vadd.f32 %v76_v48, %v75_v40  ;;  %v52_v57 = vadd.f32 %v51_v44, %v50_v36  ;;  %v137_v59 = vadd.f32 %v136_v46, %v135_v38 }
  0x9c   :  { %v154_v62 = vadd.f32 %v153_v54, %v152_v49  ;;  %v161_v63 = vadd.f32 %v160_v55, %v159_v50  ;;  %v131_v0 = vrot.slane %v130_v51, 1  ;;  %v54_v8 = vadd.f32 %v53_v58, %v45_v56 }
  0x9d   :  { %v71_v60 = vrot.slane %v70_v52, 1  ;;  %v78_v61 = vrot.slane %v77_v53, 1  ;;  %v55_v9 = vadd.f32 %v53_v58, %v52_v57  ;;  %v138_v10 = vrot.slane %v137_v59, 1 }
  0x9e   :  { %v155_v6 = vrot.slane %v154_v62, 2  ;;  %v162_v7 = vrot.slane %v161_v63, 2  ;;  %v132_v15 = vadd.f32 %v131_v0, %v130_v51 }
  0x9f   :  { %v72_v2 = vadd.f32 %v71_v60, %v70_v52  ;;  %v79_v5 = vadd.f32 %v78_v61, %v77_v53  ;;  %v139_v20 = vadd.f32 %v138_v10, %v137_v59 }
  0xa0   :  { %v156_v13 = vadd.f32 %v155_v6, %v154_v62  ;;  %v163_v14 = vadd.f32 %v162_v7, %v161_v63  ;;  %v140_v27 = vadd.f32 %v132_v15, %v53_v58 }
  0xa1   :  { %v81_v11 = vadd.f32 %v80_v1, %v72_v2  ;;  %v82_v12 = vadd.f32 %v80_v1, %v79_v5  ;;  %v141_v31 = vadd.f32 %v139_v20, %v53_v58 }
  0xa2   :  { %v157_v18 = vrot.slane %v156_v13, 1  ;;  %v164_v19 = vrot.slane %v163_v14, 1 }
  0xa3   :  { %v83_v16 = vmax.f32 %v54_v8, %v81_v11  ;;  %v84_v17 = vmax.f32 %v55_v9, %v82_v12 }
  0xa4   :  { %v158_v25 = vadd.f32 %v157_v18, %v156_v13  ;;  %v165_v26 = vadd.f32 %v164_v19, %v163_v14 }
  0xa5   :  { %v85_v21 = vsub.f32 %v54_v8, %v83_v16  ;;  %v86_v22 = vsub.f32 %v55_v9, %v84_v17  ;;  %v91_v23 = vsub.f32 %v81_v11, %v83_v16  ;;  %v92_v24 = vsub.f32 %v82_v12, %v84_v17 }
  0xa6   :  { %v166_v33 = vadd.f32 %v158_v25, %v80_v1  ;;  %v167_v34 = vadd.f32 %v165_v26, %v80_v1 }
  0xa7   :  { %v87_v28 = vmul.f32 1.442695, %v85_v21  ;;  %v89_v29 = vmul.f32 1.442695, %v86_v22  ;;  %v93_v30 = vmul.f32 1.442695, %v91_v23 }
  0xa8   :  { %v95_v32 = vmul.f32 1.442695, %v92_v24  ;;  %v168_v35 = vmax.f32 %v140_v27, %v166_v33  ;;  %v169_v36 = vmax.f32 %v141_v31, %v167_v34 }
  0xa9   :  { %220 = vpow2.f32 %v87_v28 }
  0xaa   :  { %222 = vpow2.f32 %v89_v29  ;;  %v170_v37 = vsub.f32 %v140_v27, %v168_v35  ;;  %v171_v38 = vsub.f32 %v141_v31, %v169_v36  ;;  %v176_v39 = vsub.f32 %v166_v33, %v168_v35 }
  0xab   :  { %224 = vpow2.f32 %v93_v30  ;;  %v177_v40 = vsub.f32 %v167_v34, %v169_v36 }
  0xac   :  { %226 = vpow2.f32 %v95_v32  ;;  %v172_v41 = vmul.f32 1.442695, %v170_v37  ;;  %v174_v42 = vmul.f32 1.442695, %v171_v38  ;;  %v178_v43 = vmul.f32 1.442695, %v176_v39 }
  0xad   :  { %v180_v44 = vmul.f32 1.442695, %v177_v40 }
  0xae   :  { %228 = vpow2.f32 %v172_v41 }
  0xaf   :  { %230 = vpow2.f32 %v174_v42 }
  0xb0   :  { %232 = vpow2.f32 %v178_v43 }
  0xb1   :  { %234 = vpow2.f32 %v180_v44 }
  0xb6   :  { %v221_v45 = vpop.eup %220 }
  0xb7   :  { %v223_v46 = vpop.eup %222 }
  0xb8   :  { %v225_v47 = vpop.eup %224 }
  0xb9   :  { %v227_v48 = vpop.eup %226  ;;  %v97_v49 = vadd.f32 %v225_v47, %v221_v45 }
  0xba   :  { %v98_v50 = vadd.f32 %v227_v48, %v223_v46 }
  0xbb   :  { %236 = vrcp.f32 %v97_v49  ;;  %v229_v51 = vpop.eup %228 }
  0xbc   :  { %238 = vrcp.f32 %v98_v50  ;;  %v231_v52 = vpop.eup %230 }
  0xbd   :  { %v233_v53 = vpop.eup %232 }
  0xbe   :  { %v235_v54 = vpop.eup %234  ;;  %v182_v55 = vadd.f32 %v233_v53, %v229_v51 }
  0xbf   :  { %v183_v56 = vadd.f32 %v235_v54, %v231_v52 }
  0xc0   :  { %240 = vrcp.f32 %v182_v55 }
  0xc1   :  { %242 = vrcp.f32 %v183_v56 }
  0xc8   :  { %v237_v57 = vpop.eup %236 }
  0xc9   :  { %v239_v58 = vpop.eup %238  ;;  %v101_v59 = vmul.f32 %v237_v57, %v97_v49 }
  0xca   :  { %v102_v60 = vmul.f32 %v239_v58, %v98_v50 }
  0xcb   :  { %v103_v61 = vsub.f32 2.0, %v101_v59 }
  0xcc   :  { %v104_v62 = vsub.f32 2.0, %v102_v60 }
  0xcd   :  { %v241_v63 = vpop.eup %240  ;;  %v105_v1 = vmul.f32 %v237_v57, %v103_v61 }
  0xce   :  { %v243_v0 = vpop.eup %242  ;;  %v186_v2 = vmul.f32 %v241_v63, %v182_v55  ;;  %v106_v5 = vmul.f32 %v239_v58, %v104_v62 }
  0xcf   :  { %v187_v6 = vmul.f32 %v243_v0, %v183_v56  ;;  %v107_v9 = vmul.f32 %v221_v45, %v105_v1  ;;  %v109_v10 = vmul.f32 %v225_v47, %v105_v1 }
  0xd0   :  { %v188_v7 = vsub.f32 2.0, %v186_v2  ;;  %v108_v12 = vmul.f32 %v223_v46, %v106_v5  ;;  %v110_v13 = vmul.f32 %v227_v48, %v106_v5 }
  0xd1   :  { %v189_v8 = vsub.f32 2.0, %v187_v6  ;;  %v112_v19 = vsel %vm111_vm1, %v107_v9, %v109_v10 }
  0xd2   :  { %v190_v11 = vmul.f32 %v241_v63, %v188_v7  ;;  %v113_v21 = vsel %vm111_vm1, %v108_v12, %v110_v13  ;;  %v114_v25 = vmul.f32 %v112_v19, %v292_v3 }
  0xd3   :  { %v191_v14 = vmul.f32 %v243_v0, %v189_v8  ;;  %v115_v27 = vmul.f32 %v113_v21, %v297_v4 }
  0xd4   :  { %v192_v15 = vmul.f32 %v229_v51, %v190_v11  ;;  %v194_v16 = vmul.f32 %v233_v53, %v190_v11 }
  0xd5   :  { %v193_v17 = vmul.f32 %v231_v52, %v191_v14  ;;  %v195_v18 = vmul.f32 %v235_v54, %v191_v14 }
  0xd6   :  { %v196_v20 = vsel %vm111_vm1, %v192_v15, %v194_v16 }
  0xd7   :  { %v197_v22 = vsel %vm111_vm1, %v193_v17, %v195_v18  ;;  %v200_v23 = vrot.slane %v196_v20, 4 }
  0xd8   :  { %v201_v24 = vrot.slane %v197_v22, 4 }
  0xd9   :  { %v204_v26 = vmul.f32 %v200_v23, %v292_v3 }
  0xda   :  { %v205_v28 = vmul.f32 %v201_v24, %v297_v4 }
  0xdb   :  { %v206_v29 = vsel %vm38_vm0, %v114_v25, %v204_v26 }
  0xdc   :  { %v207_v30 = vsel %vm38_vm0, %v115_v27, %v205_v28  ;;  %208 = vst [vmem:[%s333_s3] sm:$0xff] %v206_v29 }
  0xdd   :  { %209 = vst [vmem:[%s333_s3 + $0x8] sm:$0xff] %v207_v30 }
  0xde   :  { %214 = vsyncpa [#allocation3], 1 }

// kernel: lfcc_forward.2
= control target key start
LH: loop header
LB: loop body
LE: loop exit
PB: predicated region body
PF: predicated region fallthrough
CT: control target
= control target key end

     0   :  { %v166_v0 = vmov 0   ;;  %vm26_vm0 = vcmask 1043456   ;;  %vm129_vm1 = vcmask 1040384   ;;  %vm132_vm2 = vcmask 1041408   ;;  %s211_s1 = inlined_call_operand.vmem [shape: f32[2,4,1], index: 1, kind: input, shape index: {}]   ;;  %s212_s0 = inlined_call_operand.vmem [shape: f32[8,256], index: 0, kind: input, shape index: {}]   ;;  %s213_s2 = inlined_call_operand.vmem [shape: f32[1,4,1], index: 2, kind: output, shape index: {}]  }
   0x1   :  { %165 = vset.pattern.permute.xlu0 %v166_v0  ;;  %v18_v1 = vld [vmem:[%s211_s1] sm:$0xf]  ;;  %v162_v2 = vld [vmem:[%s211_s1 + $0x4] sm:$0xf]  ;;  %v17_v4 = vld [vmem:[%s212_s0 + $0x8] sm:$0xff]  ;;  %vm135_vm3 = vcmask 1042432  }
   0x2   :  { %21 = vperm.xlu0 %165, %v18_v1   ;;  %v16_v3 = vld [vmem:[%s212_s0] sm:$0xff]  ;;  %vm156_vm4 = vcmask 3072  }
   0x6   :  { %77 = vperm.xlu0 %165, %v162_v2  }
  0x7d   :  { %v22_v5 = vpop.permute.xlu0 %21 }
  0x7e   :  { %v24_v6 = vmul.f32 %v22_v5, %v16_v3  ;;  %v25_v7 = vmul.f32 %v22_v5, %v17_v4  ;;  %v43_v8 = vrot.slane %v22_v5, 4 }
  0x80   :  { %v27_v9 = vsel %vm26_vm0, %v24_v6, 0.0  ;;  %v34_v10 = vsel %vm26_vm0, %v25_v7, 0.0  ;;  %v45_v11 = vmul.f32 %v43_v8, %v16_v3  ;;  %v46_v12 = vmul.f32 %v43_v8, %v17_v4 }
  0x81   :  { %v28_v13 = vrot.slane %v27_v9, 4  ;;  %v35_v14 = vrot.slane %v34_v10, 4  ;;  %v78_v15 = vpop.permute.xlu0 %77 }
  0x82   :  { %v49_v16 = vrot.slane %v45_v11, 4  ;;  %v50_v17 = vrot.slane %v46_v12, 4  ;;  %v80_v18 = vmul.f32 %v78_v15, %v16_v3  ;;  %v81_v19 = vmul.f32 %v78_v15, %v17_v4 }
  0x83   :  { %v29_v20 = vadd.f32 %v28_v13, %v27_v9  ;;  %v36_v21 = vadd.f32 %v35_v14, %v34_v10  ;;  %v98_v22 = vrot.slane %v78_v15, 4 }
  0x84   :  { %v53_v23 = vsel %vm26_vm0, %v49_v16, 0.0  ;;  %v60_v24 = vsel %vm26_vm0, %v50_v17, 0.0  ;;  %v82_v25 = vsel %vm26_vm0, %v80_v18, 0.0  ;;  %v89_v26 = vsel %vm26_vm0, %v81_v19, 0.0 }
  0x85   :  { %v30_v27 = vrot.slane %v29_v20, 2  ;;  %v37_v28 = vrot.slane %v36_v21, 2  ;;  %v54_v29 = vrot.slane %v53_v23, 4  ;;  %v61_v30 = vrot.slane %v60_v24, 4 }
  0x86   :  { %v83_v31 = vrot.slane %v82_v25, 4  ;;  %v90_v32 = vrot.slane %v89_v26, 4  ;;  %v100_v33 = vmul.f32 %v98_v22, %v16_v3  ;;  %v101_v34 = vmul.f32 %v98_v22, %v17_v4 }
  0x87   :  { %v55_v35 = vadd.f32 %v54_v29, %v53_v23  ;;  %v62_v36 = vadd.f32 %v61_v30, %v60_v24  ;;  %v31_v41 = vadd.f32 %v30_v27, %v29_v20  ;;  %v38_v42 = vadd.f32 %v37_v28, %v36_v21 }
  0x88   :  { %v84_v37 = vadd.f32 %v83_v31, %v82_v25  ;;  %v91_v38 = vadd.f32 %v90_v32, %v89_v26  ;;  %v104_v39 = vrot.slane %v100_v33, 4  ;;  %v105_v40 = vrot.slane %v101_v34, 4 }
  0x89   :  { %v56_v43 = vrot.slane %v55_v35, 2  ;;  %v63_v44 = vrot.slane %v62_v36, 2  ;;  %v32_v57 = vrot.slane %v31_v41, 1  ;;  %v39_v58 = vrot.slane %v38_v42, 1 }
  0x8a   :  { %v85_v45 = vrot.slane %v84_v37, 2  ;;  %v92_v46 = vrot.slane %v91_v38, 2  ;;  %v108_v47 = vsel %vm26_vm0, %v104_v39, 0.0  ;;  %v115_v48 = vsel %vm26_vm0, %v105_v40, 0.0 }
  0x8b   :  { %v57_v49 = vadd.f32 %v56_v43, %v55_v35  ;;  %v64_v50 = vadd.f32 %v63_v44, %v62_v36  ;;  %v109_v53 = vrot.slane %v108_v47, 4  ;;  %v116_v54 = vrot.slane %v115_v48, 4 }
  0x8c   :  { %v86_v51 = vadd.f32 %v85_v45, %v84_v37  ;;  %v93_v52 = vadd.f32 %v92_v46, %v91_v38  ;;  %v33_v3 = vadd.f32 %v32_v57, %v31_v41  ;;  %v40_v4 = vadd.f32 %v39_v58, %v38_v42 }
  0x8d   :  { %v58_v55 = vrot.slane %v57_v49, 1  ;;  %v65_v56 = vrot.slane %v64_v50, 1  ;;  %v110_v59 = vadd.f32 %v109_v53, %v108_v47  ;;  %v117_v60 = vadd.f32 %v116_v54, %v115_v48 }
  0x8e   :  { %v87_v61 = vrot.slane %v86_v51, 1  ;;  %v94_v62 = vrot.slane %v93_v52, 1  ;;  %v41_v13 = vmul.f32 %v33_v3, %v33_v3  ;;  %v42_v14 = vmul.f32 %v40_v4, %v40_v4 }
  0x8f   :  { %v111_v63 = vrot.slane %v110_v59, 2  ;;  %v118_v0 = vrot.slane %v117_v60, 2  ;;  %v59_v1 = vadd.f32 %v58_v55, %v57_v49  ;;  %v66_v2 = vadd.f32 %v65_v56, %v64_v50 }
  0x90   :  { %v88_v7 = vadd.f32 %v87_v61, %v86_v51  ;;  %v95_v8 = vadd.f32 %v94_v62, %v93_v52 }
  0x91   :  { %v112_v5 = vadd.f32 %v111_v63, %v110_v59  ;;  %v119_v6 = vadd.f32 %v118_v0, %v117_v60  ;;  %v67_v11 = vmul.f32 %v59_v1, %v59_v1  ;;  %v68_v12 = vmul.f32 %v66_v2, %v66_v2 }
  0x92   :  { %v69_v17 = vadd.f32 %v59_v1, %v33_v3  ;;  %v70_v18 = vadd.f32 %v66_v2, %v40_v4  ;;  %v96_v19 = vmul.f32 %v88_v7, %v88_v7  ;;  %v97_v20 = vmul.f32 %v95_v8, %v95_v8 }
  0x93   :  { %v113_v9 = vrot.slane %v112_v5, 1  ;;  %v120_v10 = vrot.slane %v119_v6, 1  ;;  %v71_v25 = vadd.f32 %v67_v11, %v41_v13  ;;  %v72_v26 = vadd.f32 %v68_v12, %v42_v14 }
  0x95   :  { %v114_v15 = vadd.f32 %v113_v9, %v112_v5  ;;  %v121_v16 = vadd.f32 %v120_v10, %v119_v6 }
  0x97   :  { %v124_v21 = vadd.f32 %v114_v15, %v88_v7  ;;  %v125_v22 = vadd.f32 %v121_v16, %v95_v8  ;;  %v122_v23 = vmul.f32 %v114_v15, %v114_v15  ;;  %v123_v24 = vmul.f32 %v121_v16, %v121_v16 }
  0x99   :  { %v126_v27 = vadd.f32 %v122_v23, %v96_v19  ;;  %v127_v28 = vadd.f32 %v123_v24, %v97_v20  ;;  %v130_v29 = vsel %vm129_vm1, %v69_v17, %v124_v21  ;;  %v131_v30 = vsel %vm129_vm1, %v70_v18, %v125_v22 }
  0x9a   :  { %v133_v31 = vsel %vm132_vm2, %v130_v29, %v71_v25  ;;  %v134_v32 = vsel %vm132_vm2, %v131_v30, %v72_v26 }
  0x9b   :  { %v136_v33 = vsel %vm135_vm3, %v133_v31, %v126_v27  ;;  %v137_v34 = vsel %vm135_vm3, %v134_v32, %v127_v28 }
  0x9c   :  { %v140_v35 = vcombine.low %v136_v33, %v137_v34  ;;  %v163_v36 = vcombine.low %v137_v34, %v137_v34 }
  0x9e   :  { %v151_v37 = vsel %vm26_vm0, %v140_v35, 0.0  ;;  %v152_v38 = vsel %vm26_vm0, %v163_v36, 0.0 }
  0x9f   :  { %v153_v39 = vadd.f32 %v152_v38, %v151_v37 }
  0xa1   :  { %154 = vadd.xlane.f32.xlu1 %v153_v39 }
 0x12a   :  { %v155_v40 = vpop.xlane.xlu1 %154 }
 0x12b   :  { %157 = vst.msk [vmem:[%s213_s2] sm:$0xf] %vm156_vm4, %v155_v40 }

</bundles_post_ra>
